<compile_context>
chip_gen: v6e
topology: v6e:2x2x1
jax: 0.10.0
libtpu: 0.0.40
codegen_flags: <defaults>
</compile_context>

<pallas_src>
import math
from functools import partial

import numpy as np
import jax
import jax.numpy as jnp
from jax import lax
from jax.experimental import pallas as pl
from jax.experimental.pallas import tpu as pltpu


def _round_up(x, m):
    return (x + m - 1) // m * m


def _lcm(a, b):
    return a * b // math.gcd(a, b)


_TARGET_ROWS = 2048          # review [1]: aim for 1024-2048 LHS rows per grid step
_RHS_SINGLE_BUFFER_OK = True  # flipped to False if pl.Buffered(1) is rejected


# ---------------------------------------------------------------------------
# Kernel
# ---------------------------------------------------------------------------
def _fast_mipl_kernel(x_ref, rhs_ref, out_ref, *, bags, lmax):
    """One grid step: `bags` bags x `lmax` (padded) instances each.

    x_ref:   [bags*lmax, Qp]  instance features, column Q = pad indicator
    rhs_ref: [Qp, 2*Kp]       [:, :Kp] -> beta_u (logits half, incl. -1e30
                              bias row for pad instances), [:, Kp:] -> eta (t)
    out_ref: [bags, Kp]       per-bag softmax-weighted sum of t (f32)
    """
    kp2 = rhs_ref.shape[1]
    kp = kp2 // 2

    # Single fused lane-dense MXU matmul: logits and t in one pass, f32 acc.
    res = jnp.dot(x_ref[...], rhs_ref[...],
                  preferred_element_type=jnp.float32)      # [bags*lmax, 2Kp]
    res = res.reshape(bags, lmax, kp2)
    logits = res[:, :, :kp]                                # pad rows -> -1e30
    t = res[:, :, kp:]

    # Masked in-bag softmax over the instance axis (== scatter_softmax dim 0).
    mx = jnp.max(logits, axis=1, keepdims=True)            # [bags, 1, Kp]
    p = jnp.exp(logits - mx)                               # pad rows -> 0
    denom = jnp.sum(p, axis=1)                             # [bags, Kp]
    num = jnp.sum(p * t, axis=1)                           # [bags, Kp]

    # segment_add_csr(w * t): exact divide (review [9]) — off the EUP critical
    # path (only bags x Kp elements), so it is essentially free.
    out_ref[...] = num / denom


# ---------------------------------------------------------------------------
# Block-size planning (review [1]/[2]/[3]/[8])
# ---------------------------------------------------------------------------
def _plan_bucket(b_bags, lp, qp, kp, itemsize, vmem_cap):
    """Choose bags_per_block / padded bag count for one length bucket."""
    # out-block sublane alignment (8) and rows % 128 == 0 (unmasked MXU M).
    align = _lcm(8, 128 // math.gcd(lp, 128))

    def need(bpb):                                # review [1]: real VMEM consumers
        rows = bpb * lp
        return (2 * rows * qp * itemsize          # x block, double buffered
                + 2 * qp * 2 * kp * itemsize      # fused RHS (<=2 buffers)
                + 2 * bpb * kp * 4                # f32 out block, double buffered
                + 4 * rows * 2 * kp * 4           # f32 matmul result + softmax temps
                + (2 << 20))                      # pipeline / compiler headroom

    bpb = max(1, _TARGET_ROWS // lp)
    while bpb > 1 and need(bpb) > vmem_cap:       # shrink until the budget fits
        bpb //= 2

    if bpb >= b_bags:
        if b_bags >= 2 * align:
            # review [3]: >=2 grid steps so the parallel axis spans both v7x TCs
            bpb = _round_up((b_bags + 1) // 2, align)
        else:
            bpb = b_bags                          # one step; block == full array dims
    else:
        bpb = max(align, (bpb // align) * align)  # review [8]: aligned blocked path

    bp = _round_up(b_bags, bpb)
    vmem_limit = int(min(vmem_cap, max(2 * need(bpb), 32 << 20)))
    return bpb, bp, vmem_limit


# ---------------------------------------------------------------------------
# Device-side forward (jitted; packing, pallas_call(s), standardization)
# ---------------------------------------------------------------------------
@partial(jax.jit, static_argnames=("plan", "rhs_single"))
def _device_forward(x_cat, beta_u, beta_z, gather_idx, inv_perm, *,
                    plan, rhs_single):
    (q, p_cls, s_smp, kp, qp, dtype_name, buckets) = plan
    k = p_cls * s_smp
    cdt = jnp.dtype(dtype_name)
    f32 = jnp.float32
    n_real = x_cat.shape[0] - 1                    # last row of x_cat is all-zero

    # Fused RHS built on device (review [10]); eta / b hoisted out of the loop.
    # NOTE: b_scale == 0 for an all-zero posterior column would give inf/NaN —
    # this hazard is shared with the PyTorch reference and is not masked here.
    bu = beta_u.reshape(q, k).astype(f32)
    bz = beta_z.reshape(q, k).astype(f32)
    b_scale = jnp.sqrt(jnp.mean(bz * bz, axis=0, keepdims=True))     # [1, K]
    eta = bz / b_scale
    rhs = jnp.zeros((qp, 2 * kp), f32)
    rhs = rhs.at[:q, :k].set(bu).at[:q, kp:kp + k].set(eta)
    rhs = rhs.at[q, :kp].set(-1e30)                # bias row: pad rows' logits
    rhs = rhs.astype(cdt)

    zs = []
    for (b_bags, bp, lp, bpb, off, vmem_limit) in buckets:
        rows_total = bp * lp
        idx = gather_idx[off:off + rows_total]                       # static slice
        xg = jnp.take(x_cat, idx, axis=0).astype(f32)                # [rows, Q]
        padcol = (idx == n_real).astype(f32)[:, None]                # 1.0 on pads
        parts = [xg, padcol]
        if qp > q + 1:
            parts.append(jnp.zeros((rows_total, qp - q - 1), f32))
        lhs = jnp.concatenate(parts, axis=1).astype(cdt)             # [rows, Qp]

        rows = bpb * lp
        if rhs_single:
            # review [7]: constant block -> one VMEM buffer instead of two.
            rhs_spec = pl.BlockSpec((qp, 2 * kp), lambda g: (0, 0),
                                    pipeline_mode=pl.Buffered(1))
        else:
            rhs_spec = pl.BlockSpec((qp, 2 * kp), lambda g: (0, 0))

        z_b = pl.pallas_call(
            partial(_fast_mipl_kernel, bags=bpb, lmax=lp),
            out_shape=jax.ShapeDtypeStruct((bp, kp), jnp.float32),
            grid_spec=pltpu.PrefetchScalarGridSpec(
                num_scalar_prefetch=0,
                grid=(bp // bpb,),
                in_specs=[pl.BlockSpec((rows, qp), lambda g: (g, 0)),  # x block
                          rhs_spec],                                   # fused RHS
                out_specs=pl.BlockSpec((bpb, kp), lambda g: (g, 0)),
            ),
            compiler_params=pltpu.CompilerParams(
                dimension_semantics=("parallel",),      # bag axis (megacore)
                vmem_limit_bytes=vmem_limit),           # review [1]/[2]/[8]
        )(lhs, rhs)
        zs.append(z_b[:b_bags, :k])

    z = zs[0] if len(zs) == 1 else jnp.concatenate(zs, axis=0)
    z = jnp.take(z, inv_perm, axis=0)                   # restore original bag order

    # Final bag-standardization: tiny O(B*K) op, mirrors the PyTorch forward
    # including the whole-tensor `std = 1` guard (std is NaN only for B == 1).
    mean = jnp.mean(z, axis=0, keepdims=True)
    std = jnp.std(z, axis=0, ddof=1, keepdims=True)
    std = jnp.where(jnp.any(jnp.isnan(std)), jnp.ones_like(std), std)
    z_bag = b_scale * (z - mean) / std
    return z_bag.reshape(-1, p_cls, s_smp)


# ---------------------------------------------------------------------------
# Public wrapper (host: integer bookkeeping only)
# ---------------------------------------------------------------------------
def fast_mipl_forward(xs_list, beta_u, beta_z, *, compute_dtype=jnp.bfloat16):
    """FastMIPL.forward.

    xs_list: list of [n_i, Q] per-bag instance features (FeatureExtractor out).
    beta_u, beta_z: [Q, P, S] posterior samples.  Returns z_bag [B, P, S].
    """
    global _RHS_SINGLE_BUFFER_OK
    B = len(xs_list)
    beta_u = jnp.asarray(beta_u, jnp.float32)
    beta_z = jnp.asarray(beta_z, jnp.float32)
    Q, P, S = beta_u.shape
    K = P * S
    Kp = _round_up(K, 128)            # lane-dense matmul N / output columns
    Qp = _round_up(Q + 1, 8)          # +1 pad-indicator feature column
    itemsize = jnp.dtype(compute_dtype).itemsize

    # Per-generation VMEM cap (review [2]); fallback 64 MiB == v7x per-TC VMEM.
    try:
        phys = int(pltpu.get_tpu_info().vmem_capacity_bytes)
    except Exception:
        phys = 64 << 20
    vmem_cap = int(phys) * 3 // 4

    sizes = [int(x.shape[0]) for x in xs_list]
    offsets = np.zeros(B, np.int64)
    if B > 1:
        offsets[1:] = np.cumsum(sizes[:-1])
    n_total = int(np.sum(sizes))

    # Length buckets (review [6]): power-of-two padded-size classes -> per
    # bucket Lp, so short bags stop paying the global-max instance padding.
    by_key = {}
    for i in range(B):
        lp_i = _round_up(max(sizes[i], 1), 8)
        by_key.setdefault((lp_i - 1).bit_length(), []).append(i)

    bucket_meta, gather_chunks, bag_order = [], [], []
    off = 0
    for key in sorted(by_key):
        idxs = by_key[key]
        b_bags = len(idxs)
        lp = _round_up(max(max(sizes[i] for i in idxs), 1), 8)
        bpb, bp, vmem_limit = _plan_bucket(b_bags, lp, Qp, Kp, itemsize, vmem_cap)
        gi = np.full((bp, lp), n_total, np.int64)        # n_total -> the zero row
        for j, bag in enumerate(idxs):
            n = sizes[bag]
            if n > 0:
                gi[j, :n] = offsets[bag] + np.arange(n, dtype=np.int64)
        gather_chunks.append(gi.reshape(-1))
        bucket_meta.append((int(b_bags), int(bp), int(lp), int(bpb),
                            int(off), int(vmem_limit)))
        bag_order.extend(idxs)
        off += bp * lp

    gather_idx = jnp.asarray(np.concatenate(gather_chunks).astype(np.int32))
    inv = np.empty(B, np.int32)
    inv[np.asarray(bag_order, np.int64)] = np.arange(B, dtype=np.int32)
    inv_perm = jnp.asarray(inv)

    # Upload the real instance rows once (no padded zeros) + one zero row that
    # every padding slot gathers from (review [10]).
    x_cat = jnp.concatenate(
        [jnp.asarray(x, jnp.float32).reshape(-1, Q) for x in xs_list]
        + [jnp.zeros((1, Q), jnp.float32)], axis=0)

    plan = (int(Q), int(P), int(S), int(Kp), int(Qp),
            jnp.dtype(compute_dtype).name, tuple(bucket_meta))
    args = (x_cat, beta_u, beta_z, gather_idx, inv_perm)

    if _RHS_SINGLE_BUFFER_OK:
        try:
            return _device_forward(*args, plan=plan, rhs_single=True)
        except Exception:
            # This Pallas build rejected pipeline_mode=pl.Buffered(1) for the
            # constant RHS block (review [7]); fall back to double buffering.
            _RHS_SINGLE_BUFFER_OK = False
    return _device_forward(*args, plan=plan, rhs_single=False)


# ---------------------------------------------------------------------------
# Pure-JAX reference mirroring the PyTorch forward (scatter ops)
# ---------------------------------------------------------------------------
def reference_forward(xs_list, beta_u, beta_z):
    beta_u = jnp.asarray(beta_u, jnp.float32)
    beta_z = jnp.asarray(beta_z, jnp.float32)
    hi = lax.Precision.HIGHEST
    b = jnp.sqrt(jnp.mean(beta_z ** 2, axis=0, keepdims=True))        # [1,P,S]
    eta = beta_z / b
    x = jnp.concatenate([jnp.asarray(a, jnp.float32) for a in xs_list], axis=0)
    seg = jnp.concatenate([jnp.full((int(a.shape[0]),), i, jnp.int32)
                           for i, a in enumerate(xs_list)])
    B = len(xs_list)
    _w = jnp.einsum('iq,qps->ips', x, beta_u, precision=hi)
    seg_max = jax.ops.segment_max(_w, seg, num_segments=B)
    p = jnp.exp(_w - seg_max[seg])
    seg_sum = jax.ops.segment_sum(p, seg, num_segments=B)
    w = p / seg_sum[seg]
    t = jnp.einsum('iq,qps->ips', x, eta, precision=hi)
    z = jax.ops.segment_sum(w * t, seg, num_segments=B)               # [B,P,S]
    mean = jnp.mean(z, axis=0)
    std = jnp.std(z, axis=0, ddof=1)
    std = jnp.where(jnp.any(jnp.isnan(std)), jnp.ones_like(std), std)
    return b * (z - mean) / std


if __name__ == "__main__":
    # Q = dim_xs, P = nr_class, S = nr_samples
    Q, P, S = 16, 4, 3

    # ---- test 1: small demo (same shapes as before) -----------------------
    bag_sizes = [5, 8, 3, 6]
    key = jax.random.PRNGKey(0)
    keys = jax.random.split(key, len(bag_sizes) + 2)
    xs_list = [jax.random.normal(keys[i], (n, Q), jnp.float32)
               for i, n in enumerate(bag_sizes)]
    beta_u = 0.3 * jax.random.normal(keys[-2], (Q, P, S), jnp.float32)
    beta_z = 0.3 * jax.random.normal(keys[-1], (Q, P, S), jnp.float32) + 0.1

    ref = jax.block_until_ready(reference_forward(xs_list, beta_u, beta_z))

    # f32 compute path.  Tolerance covers MXU pass-decomposition / accumulation
    # order only — the approx-reciprocal term from v2 is gone (review [9]).
    out_f32 = jax.block_until_ready(
        fast_mipl_forward(xs_list, beta_u, beta_z, compute_dtype=jnp.float32))
    assert out_f32.shape == (len(bag_sizes), P, S)
    np.testing.assert_allclose(np.asarray(out_f32), np.asarray(ref),
                               rtol=1e-2, atol=1e-2)

    # Default bf16 compute path (review [4]): halves x / RHS HBM traffic.
    # Validated against the reference (loose tolerance: bf16 input rounding).
    out_bf16 = jax.block_until_ready(fast_mipl_forward(xs_list, beta_u, beta_z))
    assert out_bf16.shape == (len(bag_sizes), P, S)
    assert np.all(np.isfinite(np.asarray(out_bf16)))
    np.testing.assert_allclose(np.asarray(out_bf16), np.asarray(ref),
                               rtol=2e-1, atol=2e-1)

    # ---- test 2: ragged bag sizes — exercises length-bucketing (review [6]),
    # the >=2-step megacore split (review [3]) and the VMEM-budgeted blocking.
    bag_sizes2 = [9, 12, 10, 11, 9, 13, 16, 9, 10, 14, 12, 15, 11, 10, 9, 13,
                  12, 10,
                  3, 5, 7, 2, 4, 6, 1, 8,
                  38, 33, 45, 17]
    keys2 = jax.random.split(jax.random.PRNGKey(1), len(bag_sizes2) + 2)
    xs2 = [jax.random.normal(keys2[i], (n, Q), jnp.float32)
           for i, n in enumerate(bag_sizes2)]
    bu2 = 0.3 * jax.random.normal(keys2[-2], (Q, P, S), jnp.float32)
    bz2 = 0.3 * jax.random.normal(keys2[-1], (Q, P, S), jnp.float32) + 0.1

    ref2 = jax.block_until_ready(reference_forward(xs2, bu2, bz2))
    out2 = jax.block_until_ready(
        fast_mipl_forward(xs2, bu2, bz2, compute_dtype=jnp.float32))
    assert out2.shape == (len(bag_sizes2), P, S)
    np.testing.assert_allclose(np.asarray(out2), np.asarray(ref2),
                               rtol=1e-2, atol=1e-2)

    print("KERNEL_OK")
</pallas_src>

<mosaic_0001>
module attributes {stable_mosaic.version = 11 : i64} {
  func.func @_fast_mipl_kernel(%arg0: i32, %arg1: memref<32x24xf32, #tpu.memory_space<vmem>>, %arg2: memref<24x256xf32, #tpu.memory_space<vmem>>, %arg3: memref<4x128xf32, #tpu.memory_space<vmem>>) attributes {dimension_semantics = [#tpu.dimension_semantics<parallel>], iteration_bounds = array<i64: 1>, scalar_prefetch = 0 : i64, scratch_operands = 0 : i64, tpu.core_type = #tpu.core_type<tc>, window_params = [{transform_indices = @transform_0, window_bounds = array<i64: 32, 24>}, {pipeline_mode = #tpu.pipeline_mode<synchronous>, transform_indices = @transform_1, window_bounds = array<i64: 24, 256>}, {transform_indices = @transform_2, window_bounds = array<i64: 4, 128>}]} {
    %c0 = arith.constant 0 : index
    %c0_0 = arith.constant 0 : index
    %0 = vector.load %arg1[%c0, %c0_0] : memref<32x24xf32, #tpu.memory_space<vmem>>, vector<32x24xf32>
    %c0_1 = arith.constant 0 : index
    %c0_2 = arith.constant 0 : index
    %1 = vector.load %arg2[%c0_1, %c0_2] : memref<24x256xf32, #tpu.memory_space<vmem>>, vector<24x256xf32>
    %cst = arith.constant dense<0.000000e+00> : vector<32x256xf32>
    %2 = tpu.matmul %0, %1, %cst {dimension_numbers = #tpu.dot_dimension_numbers<[1], [0], [0], [1], [0, 0, 1, 1], [], []>} : vector<32x24xf32>, vector<24x256xf32>, vector<32x256xf32> -> vector<32x256xf32>
    %3 = vector.shape_cast %2 : vector<32x256xf32> to vector<4x8x256xf32>
    %4 = vector.extract_strided_slice %3 {offsets = [0, 0, 0], sizes = [4, 8, 128], strides = [1, 1, 1]} : vector<4x8x256xf32> to vector<4x8x128xf32>
    %5 = vector.extract_strided_slice %3 {offsets = [0, 0, 128], sizes = [4, 8, 128], strides = [1, 1, 1]} : vector<4x8x256xf32> to vector<4x8x128xf32>
    %cst_3 = arith.constant dense<0xFF800000> : vector<4x128xf32>
    %6 = vector.multi_reduction <maximumf>, %4, %cst_3 [1] : vector<4x8x128xf32> to vector<4x128xf32>
    %7 = vector.shape_cast %6 : vector<4x128xf32> to vector<4x1x128xf32>
    %8 = vector.broadcast %7 : vector<4x1x128xf32> to vector<4x8x128xf32>
    %9 = arith.subf %4, %8 : vector<4x8x128xf32>
    %10 = math.exp %9 : vector<4x8x128xf32>
    %cst_4 = arith.constant dense<0.000000e+00> : vector<4x128xf32>
    %11 = vector.multi_reduction <add>, %10, %cst_4 [1] : vector<4x8x128xf32> to vector<4x128xf32>
    %12 = arith.mulf %10, %5 : vector<4x8x128xf32>
    %cst_5 = arith.constant dense<0.000000e+00> : vector<4x128xf32>
    %13 = vector.multi_reduction <add>, %12, %cst_5 [1] : vector<4x8x128xf32> to vector<4x128xf32>
    %14 = arith.divf %13, %11 : vector<4x128xf32>
    %c0_6 = arith.constant 0 : index
    %c0_7 = arith.constant 0 : index
    %15 = vector.load %arg3[%c0_6, %c0_7] : memref<4x128xf32, #tpu.memory_space<vmem>>, vector<4x128xf32>
    tpu.vector_store %arg3[%c0_6, %c0_7], %14 {strides = array<i32>} : memref<4x128xf32, #tpu.memory_space<vmem>>, vector<4x128xf32>,
    return
  }
  func.func @transform_0(%arg0: i32) -> (i32, i32) {
    %c0_i32 = arith.constant 0 : i32
    %c0_i32_0 = arith.constant 0 : i32
    return %arg0, %c0_i32 : i32, i32
  }
  func.func @transform_1(%arg0: i32) -> (i32, i32) {
    %c0_i32 = arith.constant 0 : i32
    %c0_i32_0 = arith.constant 0 : i32
    %c0_i32_1 = arith.constant 0 : i32
    return %c0_i32, %c0_i32_0 : i32, i32
  }
  func.func @transform_2(%arg0: i32) -> (i32, i32) {
    %c0_i32 = arith.constant 0 : i32
    %c0_i32_0 = arith.constant 0 : i32
    return %arg0, %c0_i32 : i32, i32
  }
}

module attributes {stable_mosaic.version = 11 : i64} {
  func.func @_fast_mipl_kernel(%arg0: i32, %arg1: memref<32x24xf32, #tpu.memory_space<vmem>>, %arg2: memref<24x256xf32, #tpu.memory_space<vmem>>, %arg3: memref<4x128xf32, #tpu.memory_space<vmem>>) attributes {dimension_semantics = [#tpu.dimension_semantics<parallel>], iteration_bounds = array<i64: 1>, scalar_prefetch = 0 : i64, scratch_operands = 0 : i64, tpu.core_type = #tpu.core_type<tc>, window_params = [{transform_indices = @transform_0, window_bounds = array<i64: 32, 24>}, {pipeline_mode = #tpu.pipeline_mode<synchronous>, transform_indices = @transform_1, window_bounds = array<i64: 24, 256>}, {transform_indices = @transform_2, window_bounds = array<i64: 4, 128>}]} {
    %c0 = arith.constant 0 : index
    %c0_0 = arith.constant 0 : index
    %0 = vector.load %arg1[%c0, %c0_0] : memref<32x24xf32, #tpu.memory_space<vmem>>, vector<32x24xf32>
    %c0_1 = arith.constant 0 : index
    %c0_2 = arith.constant 0 : index
    %1 = vector.load %arg2[%c0_1, %c0_2] : memref<24x256xf32, #tpu.memory_space<vmem>>, vector<24x256xf32>
    %cst = arith.constant dense<0.000000e+00> : vector<32x256xf32>
    %2 = tpu.matmul %0, %1, %cst {dimension_numbers = #tpu.dot_dimension_numbers<[1], [0], [0], [1], [0, 0, 1, 1], [], []>} : vector<32x24xf32>, vector<24x256xf32>, vector<32x256xf32> -> vector<32x256xf32>
    %3 = vector.shape_cast %2 : vector<32x256xf32> to vector<4x8x256xf32>
    %4 = vector.extract_strided_slice %3 {offsets = [0, 0, 0], sizes = [4, 8, 128], strides = [1, 1, 1]} : vector<4x8x256xf32> to vector<4x8x128xf32>
    %5 = vector.extract_strided_slice %3 {offsets = [0, 0, 128], sizes = [4, 8, 128], strides = [1, 1, 1]} : vector<4x8x256xf32> to vector<4x8x128xf32>
    %cst_3 = arith.constant dense<0xFF800000> : vector<4x128xf32>
    %6 = vector.multi_reduction <maximumf>, %4, %cst_3 [1] : vector<4x8x128xf32> to vector<4x128xf32>
    %7 = vector.shape_cast %6 : vector<4x128xf32> to vector<4x1x128xf32>
    %8 = vector.broadcast %7 : vector<4x1x128xf32> to vector<4x8x128xf32>
    %9 = arith.subf %4, %8 : vector<4x8x128xf32>
    %10 = math.exp %9 : vector<4x8x128xf32>
    %cst_4 = arith.constant dense<0.000000e+00> : vector<4x128xf32>
    %11 = vector.multi_reduction <add>, %10, %cst_4 [1] : vector<4x8x128xf32> to vector<4x128xf32>
    %12 = arith.mulf %10, %5 : vector<4x8x128xf32>
    %cst_5 = arith.constant dense<0.000000e+00> : vector<4x128xf32>
    %13 = vector.multi_reduction <add>, %12, %cst_5 [1] : vector<4x8x128xf32> to vector<4x128xf32>
    %14 = arith.divf %13, %11 : vector<4x128xf32>
    %c0_6 = arith.constant 0 : index
    %c0_7 = arith.constant 0 : index
    %15 = vector.load %arg3[%c0_6, %c0_7] : memref<4x128xf32, #tpu.memory_space<vmem>>, vector<4x128xf32>
    tpu.vector_store %arg3[%c0_6, %c0_7], %14 {strides = array<i32>} : memref<4x128xf32, #tpu.memory_space<vmem>>, vector<4x128xf32>,
    return
  }
  func.func @transform_0(%arg0: i32) -> (i32, i32) {
    %c0_i32 = arith.constant 0 : i32
    %c0_i32_0 = arith.constant 0 : i32
    return %arg0, %c0_i32 : i32, i32
  }
  func.func @transform_1(%arg0: i32) -> (i32, i32) {
    %c0_i32 = arith.constant 0 : i32
    %c0_i32_0 = arith.constant 0 : i32
    %c0_i32_1 = arith.constant 0 : i32
    return %c0_i32, %c0_i32_0 : i32, i32
  }
  func.func @transform_2(%arg0: i32) -> (i32, i32) {
    %c0_i32 = arith.constant 0 : i32
    %c0_i32_0 = arith.constant 0 : i32
    return %arg0, %c0_i32 : i32, i32
  }
}

</mosaic_0001>

<bundles_post_ra>
// kernel: _device_forward.1
= control target key start
LH: loop header
LB: loop body
LE: loop exit
PB: predicated region body
PF: predicated region fallthrough
CT: control target
= control target key end

     0   :  { %v262_v3 = vmov 0.0   ;;  %vm21_vm0 = vcmask 195584   ;;  %vm223_vm1 = vcmask 1041409   ;;  %vm225_vm2 = vcmask 1042434   ;;  %s311_s1 = inlined_call_operand.vmem [shape: f32[24,256], index: 1, kind: input, shape index: {}]   ;;  %s312_s0 = inlined_call_operand.vmem [shape: f32[32,24], index: 0, kind: input, shape index: {}]   ;;  %s313_s2 = inlined_call_operand.vmem [shape: f32[4,128], index: 2, kind: output, shape index: {}]  }
   0x1   :  { %v20_v0 = vld [vmem:[%s311_s1 + $0x28] sm:$0xff]  ;;  %v19_v1 = vld [vmem:[%s311_s1 + $0x20] sm:$0xff]  ;;  %v18_v2 = vld [vmem:[%s311_s1 + $0x18] sm:$0xff]  ;;  %98 = vmatprep.mubr.f32.mxu0 %v262_v3  ;;  %110 = vmatprep.mubr.f32.mxu1 %v262_v3  ;;  %vm227_vm3 = vcmask 1043459  }
   0x2   :  { %60 = vmatprep.subr.mxu0 %v20_v0  ;;  %239 = vmatprep.subr.mxu1 %v20_v0  ;;  %v17_v4 = vld [vmem:[%s311_s1 + $0x10] sm:$0xff]  ;;  %v16_v5 = vld [vmem:[%s311_s1 + $0x8] sm:$0xff]  ;;  %v15_v6 = vld [vmem:[%s311_s1] sm:$0xff] }
   0x3   :  { %61 = vmatpush1.msra.mxu0 %v19_v1  ;;  %242 = vmatpush1.msra.mxu1 %v19_v1  ;;  %v11_v7 = vld [vmem:[%s312_s0] sm:$0xff]  ;;  %v13_v8 = vld [vmem:[%s312_s0 + $0x10] sm:$0xff]  ;;  %v12_v9 = vld [vmem:[%s312_s0 + $0x8] sm:$0xff] }
   0x4   :  { %62 = vmatprep.subr.mxu0 %v18_v2  ;;  %240 = vmatprep.subr.mxu1 %v18_v2  ;;  %v14_v10 = vld [vmem:[%s312_s0 + $0x18] sm:$0xff] }
   0x5   :  { %63 = vmatpush1.msra.mxu0 %v17_v4  ;;  %243 = vmatpush1.msra.mxu1 %v17_v4 }
   0x6   :  { %64 = vmatprep.subr.mxu0 %v16_v5  ;;  %241 = vmatprep.subr.mxu1 %v16_v5 }
   0x7   :  { %65 = vmatpush1.msra.mxu0 %v15_v6  ;;  %244 = vmatpush1.msra.mxu1 %v15_v6 }
   0x8   :  { %235 = vmatmul.mubr.msk.f32.vlgmr.msra.gmra.mxu0 %vm21_vm0, %v11_v7  ;;  %237 = vmatmul.mubr.msk.f32.vlgmr.msra.gmra.mxu1 %vm21_vm0, %v13_v8 }
   0x9   :  { %104 = vmatprep.mubr.f32.mxu0 %v262_v3  ;;  %116 = vmatprep.mubr.f32.mxu1 %v262_v3 }
   0xc   :  { %236 = vmatmul.mubr.msk.f32.gmra.mxu0 %vm21_vm0, %v12_v9  ;;  %238 = vmatmul.mubr.msk.f32.gmra.mxu1 %vm21_vm0, %v14_v10 }
  0xc8   :  { %v100_v11 = vpop.f32.mrf.mxu0  ;;  %v112_v12 = vpop.f32.mrf.mxu1 }
  0xc9   :  { %v123_v13 = vrot.slane %v100_v11, 4  ;;  %v135_v14 = vrot.slane %v112_v12, 4 }
  0xca   :  { %v102_v15 = vpop.f32.mrf.mxu0  ;;  %v114_v16 = vpop.f32.mrf.mxu1 }
  0xcb   :  { %v124_v17 = vmax.f32 %v100_v11, %v123_v13  ;;  %v136_v18 = vmax.f32 %v112_v12, %v135_v14 }
  0xcc   :  { %v106_v19 = vpop.f32.mrf.mxu0  ;;  %v118_v20 = vpop.f32.mrf.mxu1 }
  0xcd   :  { %v125_v21 = vrot.slane %v124_v17, 2  ;;  %v137_v22 = vrot.slane %v136_v18, 2  ;;  %v129_v23 = vrot.slane %v106_v19, 4  ;;  %v141_v24 = vrot.slane %v118_v20, 4 }
  0xce   :  { %v108_v56 = vpop.f32.mrf.mxu0  ;;  %v120_v0 = vpop.f32.mrf.mxu1 }
  0xcf   :  { %v126_v25 = vmax.f32 %v124_v17, %v125_v21  ;;  %v138_v26 = vmax.f32 %v136_v18, %v137_v22  ;;  %v130_v27 = vmax.f32 %v106_v19, %v129_v23  ;;  %v142_v28 = vmax.f32 %v118_v20, %v141_v24 }
  0xd1   :  { %v127_v29 = vrot.slane %v126_v25, 1  ;;  %v139_v30 = vrot.slane %v138_v26, 1  ;;  %v131_v31 = vrot.slane %v130_v27, 2  ;;  %v143_v32 = vrot.slane %v142_v28, 2 }
  0xd3   :  { %v128_v33 = vmax.f32 %v126_v25, %v127_v29  ;;  %v140_v34 = vmax.f32 %v138_v26, %v139_v30  ;;  %v132_v35 = vmax.f32 %v130_v27, %v131_v31  ;;  %v144_v36 = vmax.f32 %v142_v28, %v143_v32 }
  0xd5   :  { %v147_v37 = vsub.f32 %v100_v11, %v128_v33  ;;  %v149_v38 = vsub.f32 %v112_v12, %v140_v34  ;;  %v133_v39 = vrot.slane %v132_v35, 1  ;;  %v145_v40 = vrot.slane %v144_v36, 1 }
  0xd7   :  { %v151_v41 = vmul.f32 1.442695, %v147_v37  ;;  %v155_v42 = vmul.f32 1.442695, %v149_v38  ;;  %v134_v43 = vmax.f32 %v132_v35, %v133_v39  ;;  %v146_v44 = vmax.f32 %v144_v36, %v145_v40 }
  0xd9   :  { %246 = vpow2.f32 %v151_v41  ;;  %v148_v45 = vsub.f32 %v106_v19, %v134_v43  ;;  %v150_v46 = vsub.f32 %v118_v20, %v146_v44 }
  0xda   :  { %248 = vpow2.f32 %v155_v42 }
  0xdb   :  { %v153_v47 = vmul.f32 1.442695, %v148_v45  ;;  %v157_v48 = vmul.f32 1.442695, %v150_v46 }
  0xdd   :  { %250 = vpow2.f32 %v153_v47 }
  0xde   :  { %252 = vpow2.f32 %v157_v48 }
  0xe6   :  { %v247_v49 = vpop.eup %246 }
  0xe7   :  { %v249_v50 = vpop.eup %248  ;;  %v159_v51 = vrot.slane %v247_v49, 4  ;;  %v183_v59 = vmul.f32 %v247_v49, %v102_v15 }
  0xe8   :  { %v171_v52 = vrot.slane %v249_v50, 4  ;;  %v185_v63 = vmul.f32 %v249_v50, %v114_v16 }
  0xe9   :  { %v160_v53 = vadd.f32 %v247_v49, %v159_v51  ;;  %v187_v8 = vrot.slane %v183_v59, 4 }
  0xea   :  { %v251_v54 = vpop.eup %250  ;;  %v172_v55 = vadd.f32 %v249_v50, %v171_v52  ;;  %v199_v12 = vrot.slane %v185_v63, 4 }
  0xeb   :  { %v253_v57 = vpop.eup %252  ;;  %v161_v58 = vrot.slane %v160_v53, 2  ;;  %v165_v60 = vrot.slane %v251_v54, 4  ;;  %v184_v61 = vmul.f32 %v251_v54, %v108_v56  ;;  %v188_v16 = vadd.f32 %v187_v8, %v183_v59 }
  0xec   :  { %v173_v62 = vrot.slane %v172_v55, 2  ;;  %v177_v1 = vrot.slane %v253_v57, 4  ;;  %v186_v4 = vmul.f32 %v253_v57, %v120_v0  ;;  %v200_v22 = vadd.f32 %v199_v12, %v185_v63 }
  0xed   :  { %v162_v2 = vadd.f32 %v161_v58, %v160_v53  ;;  %v166_v3 = vadd.f32 %v251_v54, %v165_v60  ;;  %v193_v10 = vrot.slane %v184_v61, 4  ;;  %v189_v27 = vrot.slane %v188_v16, 2 }
  0xee   :  { %v174_v5 = vadd.f32 %v173_v62, %v172_v55  ;;  %v178_v6 = vadd.f32 %v253_v57, %v177_v1  ;;  %v205_v17 = vrot.slane %v186_v4, 4  ;;  %v201_v29 = vrot.slane %v200_v22, 2 }
  0xef   :  { %v163_v7 = vrot.slane %v162_v2, 1  ;;  %v167_v9 = vrot.slane %v166_v3, 2  ;;  %v194_v21 = vadd.f32 %v193_v10, %v184_v61  ;;  %v190_v31 = vadd.f32 %v189_v27, %v188_v16 }
  0xf0   :  { %v175_v11 = vrot.slane %v174_v5, 1  ;;  %v179_v13 = vrot.slane %v178_v6, 2  ;;  %v206_v25 = vadd.f32 %v205_v17, %v186_v4  ;;  %v202_v33 = vadd.f32 %v201_v29, %v200_v22 }
  0xf1   :  { %v164_v14 = vadd.f32 %v163_v7, %v162_v2  ;;  %v168_v15 = vadd.f32 %v167_v9, %v166_v3  ;;  %v195_v28 = vrot.slane %v194_v21, 2  ;;  %v191_v35 = vrot.slane %v190_v31, 1 }
  0xf2   :  { %v176_v18 = vadd.f32 %v175_v11, %v174_v5  ;;  %v180_v19 = vadd.f32 %v179_v13, %v178_v6  ;;  %v207_v30 = vrot.slane %v206_v25, 2  ;;  %v203_v37 = vrot.slane %v202_v33, 1 }
  0xf3   :  { %v169_v20 = vrot.slane %v168_v15, 1  ;;  %254 = vrcp.f32 %v164_v14  ;;  %v196_v32 = vadd.f32 %v195_v28, %v194_v21  ;;  %v192_v41 = vadd.f32 %v191_v35, %v190_v31 }
  0xf4   :  { %v181_v23 = vrot.slane %v180_v19, 1  ;;  %256 = vrcp.f32 %v176_v18  ;;  %v208_v34 = vadd.f32 %v207_v30, %v206_v25  ;;  %v204_v44 = vadd.f32 %v203_v37, %v202_v33 }
  0xf5   :  { %v170_v24 = vadd.f32 %v169_v20, %v168_v15  ;;  %v197_v36 = vrot.slane %v196_v32, 1 }
  0xf6   :  { %v182_v26 = vadd.f32 %v181_v23, %v180_v19  ;;  %v209_v38 = vrot.slane %v208_v34, 1 }
  0xf7   :  { %258 = vrcp.f32 %v170_v24  ;;  %v198_v42 = vadd.f32 %v197_v36, %v196_v32 }
  0xf8   :  { %260 = vrcp.f32 %v182_v26  ;;  %v210_v48 = vadd.f32 %v209_v38, %v208_v34 }
 0x100   :  { %v255_v39 = vpop.eup %254 }
 0x101   :  { %v257_v40 = vpop.eup %256  ;;  %v212_v46 = vmul.f32 %v255_v39, %v192_v41 }
 0x102   :  { %v216_v49 = vmul.f32 %v257_v40, %v204_v44 }
 0x104   :  { %v259_v43 = vpop.eup %258 }
 0x105   :  { %v261_v45 = vpop.eup %260  ;;  %v214_v47 = vmul.f32 %v259_v43, %v198_v42 }
 0x106   :  { %v218_v51 = vmul.f32 %v261_v45, %v210_v48 }
 0x107   :  { %v224_v50 = vsel %vm223_vm1, %v214_v47, %v212_v46 }
 0x108   :  { %v226_v52 = vsel %vm225_vm2, %v216_v49, %v224_v50 }
 0x109   :  { %v228_v53 = vsel %vm227_vm3, %v218_v51, %v226_v52 }
 0x10a   :  { %230 = vst [vmem:[%s313_s2] sm:$0xf] %v228_v53 }

// kernel: _device_forward.1
= control target key start
LH: loop header
LB: loop body
LE: loop exit
PB: predicated region body
PF: predicated region fallthrough
CT: control target
= control target key end

     0   :  { %v262_v3 = vmov 0.0   ;;  %vm21_vm0 = vcmask 195584   ;;  %vm223_vm1 = vcmask 1041409   ;;  %vm225_vm2 = vcmask 1042434   ;;  %s311_s1 = inlined_call_operand.vmem [shape: f32[24,256], index: 1, kind: input, shape index: {}]   ;;  %s312_s0 = inlined_call_operand.vmem [shape: f32[32,24], index: 0, kind: input, shape index: {}]   ;;  %s313_s2 = inlined_call_operand.vmem [shape: f32[4,128], index: 2, kind: output, shape index: {}]  }
   0x1   :  { %v20_v0 = vld [vmem:[%s311_s1 + $0x28] sm:$0xff]  ;;  %v19_v1 = vld [vmem:[%s311_s1 + $0x20] sm:$0xff]  ;;  %v18_v2 = vld [vmem:[%s311_s1 + $0x18] sm:$0xff]  ;;  %98 = vmatprep.mubr.f32.mxu0 %v262_v3  ;;  %110 = vmatprep.mubr.f32.mxu1 %v262_v3  ;;  %vm227_vm3 = vcmask 1043459  }
   0x2   :  { %60 = vmatprep.subr.mxu0 %v20_v0  ;;  %239 = vmatprep.subr.mxu1 %v20_v0  ;;  %v17_v4 = vld [vmem:[%s311_s1 + $0x10] sm:$0xff]  ;;  %v16_v5 = vld [vmem:[%s311_s1 + $0x8] sm:$0xff]  ;;  %v15_v6 = vld [vmem:[%s311_s1] sm:$0xff] }
   0x3   :  { %61 = vmatpush1.msra.mxu0 %v19_v1  ;;  %242 = vmatpush1.msra.mxu1 %v19_v1  ;;  %v11_v7 = vld [vmem:[%s312_s0] sm:$0xff]  ;;  %v13_v8 = vld [vmem:[%s312_s0 + $0x10] sm:$0xff]  ;;  %v12_v9 = vld [vmem:[%s312_s0 + $0x8] sm:$0xff] }
   0x4   :  { %62 = vmatprep.subr.mxu0 %v18_v2  ;;  %240 = vmatprep.subr.mxu1 %v18_v2  ;;  %v14_v10 = vld [vmem:[%s312_s0 + $0x18] sm:$0xff] }
   0x5   :  { %63 = vmatpush1.msra.mxu0 %v17_v4  ;;  %243 = vmatpush1.msra.mxu1 %v17_v4 }
   0x6   :  { %64 = vmatprep.subr.mxu0 %v16_v5  ;;  %241 = vmatprep.subr.mxu1 %v16_v5 }
   0x7   :  { %65 = vmatpush1.msra.mxu0 %v15_v6  ;;  %244 = vmatpush1.msra.mxu1 %v15_v6 }
   0x8   :  { %235 = vmatmul.mubr.msk.f32.vlgmr.msra.gmra.mxu0 %vm21_vm0, %v11_v7  ;;  %237 = vmatmul.mubr.msk.f32.vlgmr.msra.gmra.mxu1 %vm21_vm0, %v13_v8 }
   0x9   :  { %104 = vmatprep.mubr.f32.mxu0 %v262_v3  ;;  %116 = vmatprep.mubr.f32.mxu1 %v262_v3 }
   0xc   :  { %236 = vmatmul.mubr.msk.f32.gmra.mxu0 %vm21_vm0, %v12_v9  ;;  %238 = vmatmul.mubr.msk.f32.gmra.mxu1 %vm21_vm0, %v14_v10 }
  0xc8   :  { %v100_v11 = vpop.f32.mrf.mxu0  ;;  %v112_v12 = vpop.f32.mrf.mxu1 }
  0xc9   :  { %v123_v13 = vrot.slane %v100_v11, 4  ;;  %v135_v14 = vrot.slane %v112_v12, 4 }
  0xca   :  { %v102_v15 = vpop.f32.mrf.mxu0  ;;  %v114_v16 = vpop.f32.mrf.mxu1 }
  0xcb   :  { %v124_v17 = vmax.f32 %v100_v11, %v123_v13  ;;  %v136_v18 = vmax.f32 %v112_v12, %v135_v14 }
  0xcc   :  { %v106_v19 = vpop.f32.mrf.mxu0  ;;  %v118_v20 = vpop.f32.mrf.mxu1 }
  0xcd   :  { %v125_v21 = vrot.slane %v124_v17, 2  ;;  %v137_v22 = vrot.slane %v136_v18, 2  ;;  %v129_v23 = vrot.slane %v106_v19, 4  ;;  %v141_v24 = vrot.slane %v118_v20, 4 }
  0xce   :  { %v108_v56 = vpop.f32.mrf.mxu0  ;;  %v120_v0 = vpop.f32.mrf.mxu1 }
  0xcf   :  { %v126_v25 = vmax.f32 %v124_v17, %v125_v21  ;;  %v138_v26 = vmax.f32 %v136_v18, %v137_v22  ;;  %v130_v27 = vmax.f32 %v106_v19, %v129_v23  ;;  %v142_v28 = vmax.f32 %v118_v20, %v141_v24 }
  0xd1   :  { %v127_v29 = vrot.slane %v126_v25, 1  ;;  %v139_v30 = vrot.slane %v138_v26, 1  ;;  %v131_v31 = vrot.slane %v130_v27, 2  ;;  %v143_v32 = vrot.slane %v142_v28, 2 }
  0xd3   :  { %v128_v33 = vmax.f32 %v126_v25, %v127_v29  ;;  %v140_v34 = vmax.f32 %v138_v26, %v139_v30  ;;  %v132_v35 = vmax.f32 %v130_v27, %v131_v31  ;;  %v144_v36 = vmax.f32 %v142_v28, %v143_v32 }
  0xd5   :  { %v147_v37 = vsub.f32 %v100_v11, %v128_v33  ;;  %v149_v38 = vsub.f32 %v112_v12, %v140_v34  ;;  %v133_v39 = vrot.slane %v132_v35, 1  ;;  %v145_v40 = vrot.slane %v144_v36, 1 }
  0xd7   :  { %v151_v41 = vmul.f32 1.442695, %v147_v37  ;;  %v155_v42 = vmul.f32 1.442695, %v149_v38  ;;  %v134_v43 = vmax.f32 %v132_v35, %v133_v39  ;;  %v146_v44 = vmax.f32 %v144_v36, %v145_v40 }
  0xd9   :  { %246 = vpow2.f32 %v151_v41  ;;  %v148_v45 = vsub.f32 %v106_v19, %v134_v43  ;;  %v150_v46 = vsub.f32 %v118_v20, %v146_v44 }
  0xda   :  { %248 = vpow2.f32 %v155_v42 }
  0xdb   :  { %v153_v47 = vmul.f32 1.442695, %v148_v45  ;;  %v157_v48 = vmul.f32 1.442695, %v150_v46 }
  0xdd   :  { %250 = vpow2.f32 %v153_v47 }
  0xde   :  { %252 = vpow2.f32 %v157_v48 }
  0xe6   :  { %v247_v49 = vpop.eup %246 }
  0xe7   :  { %v249_v50 = vpop.eup %248  ;;  %v159_v51 = vrot.slane %v247_v49, 4  ;;  %v183_v59 = vmul.f32 %v247_v49, %v102_v15 }
  0xe8   :  { %v171_v52 = vrot.slane %v249_v50, 4  ;;  %v185_v63 = vmul.f32 %v249_v50, %v114_v16 }
  0xe9   :  { %v160_v53 = vadd.f32 %v247_v49, %v159_v51  ;;  %v187_v8 = vrot.slane %v183_v59, 4 }
  0xea   :  { %v251_v54 = vpop.eup %250  ;;  %v172_v55 = vadd.f32 %v249_v50, %v171_v52  ;;  %v199_v12 = vrot.slane %v185_v63, 4 }
  0xeb   :  { %v253_v57 = vpop.eup %252  ;;  %v161_v58 = vrot.slane %v160_v53, 2  ;;  %v165_v60 = vrot.slane %v251_v54, 4  ;;  %v184_v61 = vmul.f32 %v251_v54, %v108_v56  ;;  %v188_v16 = vadd.f32 %v187_v8, %v183_v59 }
  0xec   :  { %v173_v62 = vrot.slane %v172_v55, 2  ;;  %v177_v1 = vrot.slane %v253_v57, 4  ;;  %v186_v4 = vmul.f32 %v253_v57, %v120_v0  ;;  %v200_v22 = vadd.f32 %v199_v12, %v185_v63 }
  0xed   :  { %v162_v2 = vadd.f32 %v161_v58, %v160_v53  ;;  %v166_v3 = vadd.f32 %v251_v54, %v165_v60  ;;  %v193_v10 = vrot.slane %v184_v61, 4  ;;  %v189_v27 = vrot.slane %v188_v16, 2 }
  0xee   :  { %v174_v5 = vadd.f32 %v173_v62, %v172_v55  ;;  %v178_v6 = vadd.f32 %v253_v57, %v177_v1  ;;  %v205_v17 = vrot.slane %v186_v4, 4  ;;  %v201_v29 = vrot.slane %v200_v22, 2 }
  0xef   :  { %v163_v7 = vrot.slane %v162_v2, 1  ;;  %v167_v9 = vrot.slane %v166_v3, 2  ;;  %v194_v21 = vadd.f32 %v193_v10, %v184_v61  ;;  %v190_v31 = vadd.f32 %v189_v27, %v188_v16 }
  0xf0   :  { %v175_v11 = vrot.slane %v174_v5, 1  ;;  %v179_v13 = vrot.slane %v178_v6, 2  ;;  %v206_v25 = vadd.f32 %v205_v17, %v186_v4  ;;  %v202_v33 = vadd.f32 %v201_v29, %v200_v22 }
  0xf1   :  { %v164_v14 = vadd.f32 %v163_v7, %v162_v2  ;;  %v168_v15 = vadd.f32 %v167_v9, %v166_v3  ;;  %v195_v28 = vrot.slane %v194_v21, 2  ;;  %v191_v35 = vrot.slane %v190_v31, 1 }
  0xf2   :  { %v176_v18 = vadd.f32 %v175_v11, %v174_v5  ;;  %v180_v19 = vadd.f32 %v179_v13, %v178_v6  ;;  %v207_v30 = vrot.slane %v206_v25, 2  ;;  %v203_v37 = vrot.slane %v202_v33, 1 }
  0xf3   :  { %v169_v20 = vrot.slane %v168_v15, 1  ;;  %254 = vrcp.f32 %v164_v14  ;;  %v196_v32 = vadd.f32 %v195_v28, %v194_v21  ;;  %v192_v41 = vadd.f32 %v191_v35, %v190_v31 }
  0xf4   :  { %v181_v23 = vrot.slane %v180_v19, 1  ;;  %256 = vrcp.f32 %v176_v18  ;;  %v208_v34 = vadd.f32 %v207_v30, %v206_v25  ;;  %v204_v44 = vadd.f32 %v203_v37, %v202_v33 }
  0xf5   :  { %v170_v24 = vadd.f32 %v169_v20, %v168_v15  ;;  %v197_v36 = vrot.slane %v196_v32, 1 }
  0xf6   :  { %v182_v26 = vadd.f32 %v181_v23, %v180_v19  ;;  %v209_v38 = vrot.slane %v208_v34, 1 }
  0xf7   :  { %258 = vrcp.f32 %v170_v24  ;;  %v198_v42 = vadd.f32 %v197_v36, %v196_v32 }
  0xf8   :  { %260 = vrcp.f32 %v182_v26  ;;  %v210_v48 = vadd.f32 %v209_v38, %v208_v34 }
 0x100   :  { %v255_v39 = vpop.eup %254 }
 0x101   :  { %v257_v40 = vpop.eup %256  ;;  %v212_v46 = vmul.f32 %v255_v39, %v192_v41 }
 0x102   :  { %v216_v49 = vmul.f32 %v257_v40, %v204_v44 }
 0x104   :  { %v259_v43 = vpop.eup %258 }
 0x105   :  { %v261_v45 = vpop.eup %260  ;;  %v214_v47 = vmul.f32 %v259_v43, %v198_v42 }
 0x106   :  { %v218_v51 = vmul.f32 %v261_v45, %v210_v48 }
 0x107   :  { %v224_v50 = vsel %vm223_vm1, %v214_v47, %v212_v46 }
 0x108   :  { %v226_v52 = vsel %vm225_vm2, %v216_v49, %v224_v50 }
 0x109   :  { %v228_v53 = vsel %vm227_vm3, %v218_v51, %v226_v52 }
 0x10a   :  { %230 = vst [vmem:[%s313_s2] sm:$0xf] %v228_v53 }

</bundles_post_ra>
